<compile_context>
chip_gen: v6e
topology: v6e:2x2x1
jax: 0.10.0
libtpu: 0.0.40
codegen_flags: <defaults>
</compile_context>

<pallas_src>
import functools

import jax
import jax.numpy as jnp
from jax.experimental import pallas as pl
from jax.experimental.pallas import tpu as pltpu


def _round_up(n, m):
    return ((n + m - 1) // m) * m


def _default_compute_dtype():
    """bf16 tanh / MXU operands on bf16-native generations (v6e / v7x);
    f32 elsewhere (v5e has no bf16 VPU/EUP)."""
    try:
        kind = jax.devices()[0].device_kind.lower()
    except Exception:
        return jnp.float32
    if any(tag in kind for tag in ("v6", "v7", "7x")):
        return jnp.bfloat16
    return jnp.float32


def _mlp_kernel(x_ref, w1_ref, b1_ref, w2_ref, b2_ref, w3_ref, b3_ref,
                w4c_ref, b4_ref, u_ref, *, compute_dtype):
    """Fused 4-layer MLP on one lane-dense batch tile.

    x_ref/u_ref: (1, TILE_B); w1/b1: (32,1); w2/w3: (H,32)/(H,H) in
    compute_dtype; b2/b3: (H,1) f32; w4c: (H,1) f32 column; b4: (1,1) f32.
    """
    cd = compute_dtype
    x = x_ref[...]                                                # (1, TB) f32

    # Layer 1: Linear(1, 32).  K=1 -> VPU broadcast outer product, no MXU.
    # Pre-activation in f32, tanh in the compute dtype (bf16 EUP on v6e/v7x).
    h = jnp.tanh((w1_ref[...] * x + b1_ref[...]).astype(cd))     # (32, TB) cd

    # Layer 2: (H, 32) @ (32, TB) on the MXU; operands in compute dtype,
    # f32 accumulation; bias add + tanh input in f32 then cast.
    h = jnp.dot(w2_ref[...], h,
                preferred_element_type=jnp.float32) + b2_ref[...]
    h = jnp.tanh(h.astype(cd))                                    # (H, TB) cd

    # Layer 3: (H, H) @ (H, TB)
    h = jnp.dot(w3_ref[...], h,
                preferred_element_type=jnp.float32) + b3_ref[...]
    h = jnp.tanh(h.astype(cd))                                    # (H, TB) cd

    # Layer 4: Linear(H, 1) as a VPU broadcast-multiply + XLU sublane reduce
    # in f32 (M=1, K=H -> MXU would be <3% utilized and drain serially).
    u = jnp.sum(w4c_ref[...] * h.astype(jnp.float32),
                axis=0, keepdims=True)                            # (1, TB) f32
    u_ref[...] = (u + b4_ref[...]).astype(u_ref.dtype)


def fully_connected_forward(x, params, tile_b=8192, compute_dtype=None):
    """Returns (x, u) exactly like FullyConnected.forward with default args
    (symm=Identity(), symm_method='approx' -> u = mlp(x))."""
    w1, b1, w2, b2, w3, b3, w4, b4 = params
    hdim = w2.shape[0]
    B = x.shape[0]

    if compute_dtype is None:
        compute_dtype = _default_compute_dtype()

    # ---- batch tiling: lane-dense, no wrapper pad / slice ------------------
    if B < 128:
        tile_b = B                    # block == full array dims; grid = (1,)
    else:
        tile_b = max(128, _round_up(int(tile_b), 128))
        half = _round_up(pl.cdiv(B, 2), 128)   # >=2 grid tiles (v7x megacore)
        lanes_floor = (B // 128) * 128         # keep block_shape <= array dims
        tile_b = min(tile_b, half, lanes_floor, 32768)  # 32768: v7x VMEM cap
    grid = (pl.cdiv(B, tile_b),)

    # Feature-major layout: batch on the 128-lane axis.  (B,1)->(1,B) is a free
    # reshape; the ragged final block (if any) is masked by Pallas, and padded
    # lanes are safe because the kernel never mixes lanes.
    x_t = x.astype(jnp.float32).reshape(1, B)

    # Weights: (out, in) orientation; layer-2/3 weights pre-cast once to the
    # compute dtype; layer-4 weight pre-laid-out as an (H, 1) f32 column for
    # the VPU MAC; biases stay f32.
    weights = (w1.astype(jnp.float32), b1.astype(jnp.float32),
               w2.astype(compute_dtype), b2.astype(jnp.float32),
               w3.astype(compute_dtype), b3.astype(jnp.float32),
               w4.reshape(hdim, 1).astype(jnp.float32),
               b4.astype(jnp.float32))

    def _resident_spec(arr):
        # Whole-array block, constant index_map -> never re-fetched.
        nd = arr.ndim
        return pl.BlockSpec(arr.shape, lambda i, _nd=nd: (0,) * _nd)

    io_spec = pl.BlockSpec((1, tile_b), lambda i: (0, i))

    # ---- VMEM budget (estimate + margin, clamped to a safe scoped limit) ---
    def _padded_bytes(shape, itemsize):
        rows = shape[0] if len(shape) >= 2 else 1
        cols = shape[-1]
        return _round_up(max(rows, 1), 8) * _round_up(max(cols, 1), 128) * itemsize

    weight_bytes = sum(2 * _padded_bytes(w.shape, w.dtype.itemsize)
                       for w in weights)
    io_bytes = 2 * 2 * _padded_bytes((1, tile_b), 4)     # double-buffered x/u
    act_rows = 32 + 4 * _round_up(hdim, 8) + 16          # generous temporaries
    act_bytes = 2 * act_rows * _round_up(tile_b, 128) * 4
    vmem_limit = min(max(weight_bytes + io_bytes + act_bytes + (4 << 20),
                         16 << 20), 48 << 20)

    # Advisory cost for XLA's scheduler around the custom call.
    macs = 1 * 32 + 32 * hdim + hdim * hdim + hdim
    cost = pl.CostEstimate(
        flops=int(B * (2 * macs + 32 + 2 * hdim + 1)),
        transcendentals=int(B * (32 + 2 * hdim)),
        bytes_accessed=int(8 * B + sum(int(w.size) * w.dtype.itemsize
                                       for w in weights)),
    )

    kernel = functools.partial(_mlp_kernel, compute_dtype=compute_dtype)

    u_t = pl.pallas_call(
        kernel,
        out_shape=jax.ShapeDtypeStruct((1, B), jnp.float32),
        grid=grid,
        in_specs=[io_spec] + [_resident_spec(w) for w in weights],
        out_specs=io_spec,
        compiler_params=pltpu.CompilerParams(
            dimension_semantics=("parallel",),   # megacore sharding on v7x
            vmem_limit_bytes=int(vmem_limit)),
        cost_estimate=cost,
    )(x_t, *weights)

    u = u_t.reshape(B, 1)

    # Identity symmetry: inf_x = 0 and inf_u = 0, so the 'approx' correction
    # is a no-op and u = mlp(x).
    return x, u


def init_params(key, hdim=10):
    """Xavier-uniform weights (bound = sqrt(6/(fan_in+fan_out))), biases = 0.01,
    matching FullyConnected._init_weights.  Weights stored (out, in)."""
    def xavier(key, fan_out, fan_in):
        bound = (6.0 / (fan_in + fan_out)) ** 0.5
        return jax.random.uniform(key, (fan_out, fan_in), jnp.float32,
                                  minval=-bound, maxval=bound)

    k1, k2, k3, k4 = jax.random.split(key, 4)
    w1 = xavier(k1, 32, 1)                  # Linear(1, 32)
    b1 = jnp.full((32, 1), 0.01, jnp.float32)
    w2 = xavier(k2, hdim, 32)               # Linear(32, hdim)
    b2 = jnp.full((hdim, 1), 0.01, jnp.float32)
    w3 = xavier(k3, hdim, hdim)             # Linear(hdim, hdim)
    b3 = jnp.full((hdim, 1), 0.01, jnp.float32)
    w4 = xavier(k4, 1, hdim)                # Linear(hdim, 1)
    b4 = jnp.full((1, 1), 0.01, jnp.float32)
    return (w1, b1, w2, b2, w3, b3, w4, b4)


def _reference_mlp(x, params):
    w1, b1, w2, b2, w3, b3, w4, b4 = params
    h = jnp.tanh(x @ w1.T + b1.T)
    h = jnp.tanh(h @ w2.T + b2.T)
    h = jnp.tanh(h @ w3.T + b3.T)
    return h @ w4.T + b4.T


if __name__ == "__main__":
    key = jax.random.PRNGKey(0)
    k_param, k_x1, k_x2 = jax.random.split(key, 3)

    hdim = 10
    params = init_params(k_param, hdim=hdim)

    # Tolerance depends on the auto-selected compute path: bf16 tanh/dots on
    # v6e/v7x, f32 everywhere else.
    cd = _default_compute_dtype()
    atol, rtol = (5e-2, 5e-2) if cd == jnp.bfloat16 else (1e-5, 1e-5)

    # Small primary check: B = 8 -> single (1, 8) block (full-array dims).
    B = 8
    x = jax.random.normal(k_x1, (B, 1), jnp.float32)
    x_out, u = fully_connected_forward(x, params)
    jax.block_until_ready(u)
    u_ref = _reference_mlp(x, params)
    assert u.shape == (B, 1)
    assert jnp.allclose(x_out, x)
    assert jnp.allclose(u, u_ref, atol=atol, rtol=rtol)

    # Multi-tile + ragged-batch check: B = 300 -> tile_b = 256, grid = (2,),
    # masked final block (44 throwaway lanes), no wrapper pad/slice.
    x2 = jax.random.normal(k_x2, (300, 1), jnp.float32)
    _, u2 = fully_connected_forward(x2, params)
    jax.block_until_ready(u2)
    u2_ref = _reference_mlp(x2, params)
    assert u2.shape == (300, 1)
    assert jnp.allclose(u2, u2_ref, atol=atol, rtol=rtol)

    print("KERNEL_OK")
</pallas_src>

<mosaic_0001>
module attributes {stable_mosaic.version = 11 : i64} {
  func.func @_mlp_kernel(%arg0: i32, %arg1: memref<1x8xf32, #tpu.memory_space<vmem>>, %arg2: memref<32x1xf32, #tpu.memory_space<vmem>>, %arg3: memref<32x1xf32, #tpu.memory_space<vmem>>, %arg4: memref<10x32xf32, #tpu.memory_space<vmem>>, %arg5: memref<10x1xf32, #tpu.memory_space<vmem>>, %arg6: memref<10x10xf32, #tpu.memory_space<vmem>>, %arg7: memref<10x1xf32, #tpu.memory_space<vmem>>, %arg8: memref<10x1xf32, #tpu.memory_space<vmem>>, %arg9: memref<1x1xf32, #tpu.memory_space<vmem>>, %arg10: memref<1x8xf32, #tpu.memory_space<vmem>>) attributes {dimension_semantics = [#tpu.dimension_semantics<parallel>], iteration_bounds = array<i64: 1>, scalar_prefetch = 0 : i64, scratch_operands = 0 : i64, tpu.core_type = #tpu.core_type<tc>, window_params = [{transform_indices = @transform_0, window_bounds = array<i64: 1, 8>}, {pipeline_mode = #tpu.pipeline_mode<synchronous>, transform_indices = @transform_1, window_bounds = array<i64: 32, 1>}, {pipeline_mode = #tpu.pipeline_mode<synchronous>, transform_indices = @transform_2, window_bounds = array<i64: 32, 1>}, {pipeline_mode = #tpu.pipeline_mode<synchronous>, transform_indices = @transform_3, window_bounds = array<i64: 10, 32>}, {pipeline_mode = #tpu.pipeline_mode<synchronous>, transform_indices = @transform_4, window_bounds = array<i64: 10, 1>}, {pipeline_mode = #tpu.pipeline_mode<synchronous>, transform_indices = @transform_5, window_bounds = array<i64: 10, 10>}, {pipeline_mode = #tpu.pipeline_mode<synchronous>, transform_indices = @transform_6, window_bounds = array<i64: 10, 1>}, {pipeline_mode = #tpu.pipeline_mode<synchronous>, transform_indices = @transform_7, window_bounds = array<i64: 10, 1>}, {pipeline_mode = #tpu.pipeline_mode<synchronous>, transform_indices = @transform_8, window_bounds = array<i64: 1, 1>}, {transform_indices = @transform_9, window_bounds = array<i64: 1, 8>}]} {
    %c0 = arith.constant 0 : index
    %c0_0 = arith.constant 0 : index
    %0 = vector.load %arg1[%c0, %c0_0] : memref<1x8xf32, #tpu.memory_space<vmem>>, vector<1x8xf32>
    %c0_1 = arith.constant 0 : index
    %c0_2 = arith.constant 0 : index
    %1 = vector.load %arg2[%c0_1, %c0_2] : memref<32x1xf32, #tpu.memory_space<vmem>>, vector<32x1xf32>
    %2 = vector.broadcast %1 : vector<32x1xf32> to vector<32x8xf32>
    %3 = vector.broadcast %0 : vector<1x8xf32> to vector<32x8xf32>
    %4 = arith.mulf %2, %3 : vector<32x8xf32>
    %c0_3 = arith.constant 0 : index
    %c0_4 = arith.constant 0 : index
    %5 = vector.load %arg3[%c0_3, %c0_4] : memref<32x1xf32, #tpu.memory_space<vmem>>, vector<32x1xf32>
    %6 = vector.broadcast %5 : vector<32x1xf32> to vector<32x8xf32>
    %7 = arith.addf %4, %6 : vector<32x8xf32>
    %8 = math.tanh %7 : vector<32x8xf32>
    %c0_5 = arith.constant 0 : index
    %c0_6 = arith.constant 0 : index
    %9 = vector.load %arg4[%c0_5, %c0_6] : memref<10x32xf32, #tpu.memory_space<vmem>>, vector<10x32xf32>
    %cst = arith.constant dense<0.000000e+00> : vector<10x8xf32>
    %10 = tpu.matmul %9, %8, %cst {dimension_numbers = #tpu.dot_dimension_numbers<[1], [0], [0], [1], [0, 0, 1, 1], [], []>} : vector<10x32xf32>, vector<32x8xf32>, vector<10x8xf32> -> vector<10x8xf32>
    %c0_7 = arith.constant 0 : index
    %c0_8 = arith.constant 0 : index
    %11 = vector.load %arg5[%c0_7, %c0_8] : memref<10x1xf32, #tpu.memory_space<vmem>>, vector<10x1xf32>
    %12 = vector.broadcast %11 : vector<10x1xf32> to vector<10x8xf32>
    %13 = arith.addf %10, %12 : vector<10x8xf32>
    %14 = math.tanh %13 : vector<10x8xf32>
    %c0_9 = arith.constant 0 : index
    %c0_10 = arith.constant 0 : index
    %15 = vector.load %arg6[%c0_9, %c0_10] : memref<10x10xf32, #tpu.memory_space<vmem>>, vector<10x10xf32>
    %cst_11 = arith.constant dense<0.000000e+00> : vector<10x8xf32>
    %16 = tpu.matmul %15, %14, %cst_11 {dimension_numbers = #tpu.dot_dimension_numbers<[1], [0], [0], [1], [0, 0, 1, 1], [], []>} : vector<10x10xf32>, vector<10x8xf32>, vector<10x8xf32> -> vector<10x8xf32>
    %c0_12 = arith.constant 0 : index
    %c0_13 = arith.constant 0 : index
    %17 = vector.load %arg7[%c0_12, %c0_13] : memref<10x1xf32, #tpu.memory_space<vmem>>, vector<10x1xf32>
    %18 = vector.broadcast %17 : vector<10x1xf32> to vector<10x8xf32>
    %19 = arith.addf %16, %18 : vector<10x8xf32>
    %20 = math.tanh %19 : vector<10x8xf32>
    %c0_14 = arith.constant 0 : index
    %c0_15 = arith.constant 0 : index
    %21 = vector.load %arg8[%c0_14, %c0_15] : memref<10x1xf32, #tpu.memory_space<vmem>>, vector<10x1xf32>
    %22 = vector.broadcast %21 : vector<10x1xf32> to vector<10x8xf32>
    %23 = arith.mulf %22, %20 : vector<10x8xf32>
    %cst_16 = arith.constant dense<0.000000e+00> : vector<8xf32>
    %24 = vector.multi_reduction <add>, %23, %cst_16 [0] : vector<10x8xf32> to vector<8xf32>
    %25 = vector.shape_cast %24 : vector<8xf32> to vector<1x8xf32>
    %c0_17 = arith.constant 0 : index
    %c0_18 = arith.constant 0 : index
    %26 = vector.load %arg9[%c0_17, %c0_18] : memref<1x1xf32, #tpu.memory_space<vmem>>, vector<1x1xf32>
    %27 = vector.broadcast %26 : vector<1x1xf32> to vector<1x8xf32>
    %28 = arith.addf %25, %27 : vector<1x8xf32>
    %c0_19 = arith.constant 0 : index
    %c0_20 = arith.constant 0 : index
    %29 = vector.load %arg10[%c0_19, %c0_20] : memref<1x8xf32, #tpu.memory_space<vmem>>, vector<1x8xf32>
    tpu.vector_store %arg10[%c0_19, %c0_20], %28 {strides = array<i32>} : memref<1x8xf32, #tpu.memory_space<vmem>>, vector<1x8xf32>,
    return
  }
  func.func @transform_0(%arg0: i32) -> (i32, i32) {
    %c0_i32 = arith.constant 0 : i32
    %c0_i32_0 = arith.constant 0 : i32
    return %c0_i32, %arg0 : i32, i32
  }
  func.func @transform_1(%arg0: i32) -> (i32, i32) {
    %c0_i32 = arith.constant 0 : i32
    %c0_i32_0 = arith.constant 0 : i32
    %c0_i32_1 = arith.constant 0 : i32
    return %c0_i32, %c0_i32_0 : i32, i32
  }
  func.func @transform_2(%arg0: i32) -> (i32, i32) {
    %c0_i32 = arith.constant 0 : i32
    %c0_i32_0 = arith.constant 0 : i32
    %c0_i32_1 = arith.constant 0 : i32
    return %c0_i32, %c0_i32_0 : i32, i32
  }
  func.func @transform_3(%arg0: i32) -> (i32, i32) {
    %c0_i32 = arith.constant 0 : i32
    %c0_i32_0 = arith.constant 0 : i32
    %c0_i32_1 = arith.constant 0 : i32
    return %c0_i32, %c0_i32_0 : i32, i32
  }
  func.func @transform_4(%arg0: i32) -> (i32, i32) {
    %c0_i32 = arith.constant 0 : i32
    %c0_i32_0 = arith.constant 0 : i32
    %c0_i32_1 = arith.constant 0 : i32
    return %c0_i32, %c0_i32_0 : i32, i32
  }
  func.func @transform_5(%arg0: i32) -> (i32, i32) {
    %c0_i32 = arith.constant 0 : i32
    %c0_i32_0 = arith.constant 0 : i32
    %c0_i32_1 = arith.constant 0 : i32
    return %c0_i32, %c0_i32_0 : i32, i32
  }
  func.func @transform_6(%arg0: i32) -> (i32, i32) {
    %c0_i32 = arith.constant 0 : i32
    %c0_i32_0 = arith.constant 0 : i32
    %c0_i32_1 = arith.constant 0 : i32
    return %c0_i32, %c0_i32_0 : i32, i32
  }
  func.func @transform_7(%arg0: i32) -> (i32, i32) {
    %c0_i32 = arith.constant 0 : i32
    %c0_i32_0 = arith.constant 0 : i32
    %c0_i32_1 = arith.constant 0 : i32
    return %c0_i32, %c0_i32_0 : i32, i32
  }
  func.func @transform_8(%arg0: i32) -> (i32, i32) {
    %c0_i32 = arith.constant 0 : i32
    %c0_i32_0 = arith.constant 0 : i32
    %c0_i32_1 = arith.constant 0 : i32
    return %c0_i32, %c0_i32_0 : i32, i32
  }
  func.func @transform_9(%arg0: i32) -> (i32, i32) {
    %c0_i32 = arith.constant 0 : i32
    %c0_i32_0 = arith.constant 0 : i32
    return %c0_i32, %arg0 : i32, i32
  }
}

</mosaic_0001>

<bundles_post_ra>
// kernel: tpu_custom_call.1
= control target key start
LH: loop header
LB: loop body
LE: loop exit
PB: predicated region body
PF: predicated region fallthrough
CT: control target
= control target key end

     0   :  { %s549_s0 = inlined_call_operand.vmem [shape: f32[1,8], index: 0, kind: input, shape index: {}]   ;;  %s550_s1 = inlined_call_operand.vmem [shape: f32[32,1], index: 1, kind: input, shape index: {}]   ;;  %s551_s2 = inlined_call_operand.vmem [shape: f32[32,1], index: 2, kind: input, shape index: {}]   ;;  %s552_s3 = inlined_call_operand.vmem [shape: f32[10,32], index: 3, kind: input, shape index: {}]   ;;  %s553_s4 = inlined_call_operand.vmem [shape: f32[10,1], index: 4, kind: input, shape index: {}]   ;;  %s554_s5 = inlined_call_operand.vmem [shape: f32[10,10], index: 5, kind: input, shape index: {}]   ;;  %s555_s6 = inlined_call_operand.vmem [shape: f32[10,1], index: 6, kind: input, shape index: {}]   ;;  %s556_s7 = inlined_call_operand.vmem [shape: f32[10,1], index: 7, kind: input, shape index: {}]   ;;  %s557_s8 = inlined_call_operand.<no memory space> [shape: f32[1,1], index: 8, kind: input, shape index: {}]   ;;  %s558_s9 = inlined_call_operand.hbm [shape: f32[1,8], index: 9, kind: output, shape index: {}]  }
   0x1   :  { %v14_v0 = vstv %s557_s8 }
   0x2   :  { %15 = vst [vmem:[#allocation2] sm:$0x1] %v14_v0 }
   0x3   :  { %v73_v1 = vld [vmem:[%s551_s2 + $0x18] sm:$0xff]  ;;  %v430_v3 = vmov 0   ;;  %v38_v4 = vld [vmem:[%s550_s1 + $0x10] sm:$0xff]  ;;  %v37_v5 = vld [vmem:[%s550_s1 + $0x8] sm:$0xff] }
   0x4   :  { %v39_v2 = vld [vmem:[%s550_s1 + $0x18] sm:$0xff]  ;;  %391 = vset.pattern.permute.xlu1 %v430_v3  ;;  %390 = vset.pattern.permute.xlu0 %v430_v3 }
   0x5   :  { %91 = vperm.xlu1 %391, %v73_v1   ;;  %57 = vperm.xlu0 %390, %v39_v2  }
   0x6   :  { %16 = vsyncpa [#allocation4], 0  ;;  %v72_v6 = vld [vmem:[%s551_s2 + $0x10] sm:$0xff]  ;;  %v36_v7 = vld [vmem:[%s550_s1] sm:$0xff]  ;;  %vm116_vm0 = vcmask 261120   ;;  %vm214_vm1 = vcmask 80896   ;;  %v333_v0 = vlaneseq }
   0x7   :  { %v71_v8 = vld [vmem:[%s551_s2 + $0x8] sm:$0xff]  ;;  %v70_v9 = vld [vmem:[%s551_s2] sm:$0xff]  ;;  %vm221_vm2 = vcmask 1041408   ;;  %vm316_vm3 = vcmask 64512   ;;  %vm318_vm4 = vcmask 58368   ;;  %vm338_vm5 = vcmask 57344  }
   0x8   :  { %v105_v10 = vld [vmem:[%s553_s4 + $0x8] sm:$0x3]  ;;  %v104_v11 = vld [vmem:[%s553_s4] sm:$0xff]  ;;  %v334_v3 = vshrl.u32 %v333_v0, 7 }
   0x9   :  { %52 = vperm.xlu0 %390, %v38_v4   ;;  %47 = vperm.xlu1 %391, %v37_v5   ;;  %v202_v12 = vld [vmem:[%s555_s6] sm:$0xff]  ;;  %v203_v13 = vld [vmem:[%s555_s6 + $0x8] sm:$0x3] }
   0xa   :  { %v302_v14 = vld [vmem:[%s556_s7] sm:$0xff]  ;;  %v303_v15 = vld [vmem:[%s556_s7 + $0x8] sm:$0x3] }
   0xb   :  { %v327_v16 = vld [vmem:[#allocation2] sm:$0x1]  ;;  %v103_v39 = vld [vmem:[%s552_s3 + $0x8] sm:$0x3] }
   0xc   :  { %v102_v17 = vld [vmem:[%s552_s3] sm:$0xff]  ;;  %v201_v49 = vld [vmem:[%s554_s5 + $0x8] sm:$0x3] }
   0xd   :  { %86 = vperm.xlu0 %390, %v72_v6   ;;  %42 = vperm.xlu1 %391, %v36_v7   ;;  %v354_v18 = vld [vmem:[%s549_s0] ss:$0 sm:$0xff]  ;;  %v335_v6 = vsub.s32 0, %v334_v3 }
   0xe   :  { %378 = vmatprep.mubr.msk.f32.mxu0 %vm116_vm0, %v102_v17  ;;  %v200_v40 = vld [vmem:[%s554_s5] sm:$0xff]  ;;  %s431_s5 = smov [#allocation3]  }
   0xf   :  { %385 = vmatprep.mubr.msk.f32.mxu1 %vm214_vm1, %v200_v40  ;;  %s346_s19 = sshll.u32 %s431_s5, 4  ;;  %s347_s19 = int_to_ptr.vmem [resolvable:$true] %s346_s19 }
  0x10   :  { %s408_s20 = scalar_lea.vmem %s347_s19, 16  ;;  %s412_s21 = scalar_lea.vmem %s347_s19, 32 }
  0x11   :  { %81 = vperm.xlu0 %390, %v71_v8   ;;  %76 = vperm.xlu1 %391, %v70_v9   ;;  %p409_p0 = scmp.ne.s32.totalorder %s347_s19, %s408_s20  ;;  %p413_p1 = scmp.lt.s32.totalorder %s347_s19, %s347_s19 }
  0x12   :  { %p414_p2 = scmp.lt.s32.totalorder %s412_s21, %s408_s20 }
  0x14   :  { %p415_p3 = por %p414_p2, %p413_p1 }
  0x15   :  { %113 = vperm.xlu0 %390, %v105_v10   ;;  %108 = vperm.xlu1 %391, %v104_v11  }
  0x16   :  { %p416_p4 = pnand %p415_p3, %p409_p0 }
  0x19   :  { %206 = vperm.xlu0 %390, %v202_v12   ;;  %211 = vperm.xlu1 %391, %v203_v13  }
  0x1d   :  { %306 = vperm.xlu0 %390, %v302_v14   ;;  %311 = vperm.xlu1 %391, %v303_v15  }
  0x21   :  { %330 = vperm.xlu0 %390, %v327_v16  }
  0x80   :  { %v92_v19 = vpop.permute.xlu1 %91  ;;  %v58_v20 = vpop.permute.xlu0 %57 }
  0x81   :  { %v69_v21 = vmul.f32 %v354_v18, %v58_v20 }
  0x83   :  { %v97_v22 = vadd.f32 %v92_v19, %v69_v21 }
  0x84   :  { %v53_v23 = vpop.permute.xlu0 %52  ;;  %v48_v24 = vpop.permute.xlu1 %47 }
  0x85   :  { %392 = vtanh.f32 %v97_v22  ;;  %v68_v25 = vmul.f32 %v354_v18, %v53_v23  ;;  %v67_v29 = vmul.f32 %v354_v18, %v48_v24 }
  0x88   :  { %v87_v26 = vpop.permute.xlu0 %86  ;;  %v43_v27 = vpop.permute.xlu1 %42 }
  0x89   :  { %v96_v28 = vadd.f32 %v87_v26, %v68_v25  ;;  %v66_v30 = vmul.f32 %v354_v18, %v43_v27 }
  0x8b   :  { %394 = vtanh.f32 %v96_v28 }
  0x8c   :  { %v82_v31 = vpop.permute.xlu0 %81  ;;  %v77_v32 = vpop.permute.xlu1 %76 }
  0x8d   :  { %v95_v33 = vadd.f32 %v82_v31, %v67_v29  ;;  %v94_v34 = vadd.f32 %v77_v32, %v66_v30 }
  0x8f   :  { %396 = vtanh.f32 %v95_v33 }
  0x90   :  { %398 = vtanh.f32 %v94_v34  ;;  %v114_v41 = vpop.permute.xlu0 %113  ;;  %v109_v44 = vpop.permute.xlu1 %108 }
  0x92   :  { %v393_v35 = vpop.eup %392 }
  0x93   :  { %370 = vmatprep.subr.mxu0 %v393_v35 }
  0x94   :  { %371 = vmatpush3.msra.mxu0 %v393_v35  ;;  %v212_v50 = vpop.permute.xlu1 %211  ;;  %v207_v53 = vpop.permute.xlu0 %206 }
  0x98   :  { %v395_v36 = vpop.eup %394  ;;  %v312_v57 = vpop.permute.xlu1 %311 }
  0x99   :  { %372 = vmatprep.subr.mxu0 %v395_v36  ;;  %v307_v60 = vpop.permute.xlu0 %306 }
  0x9a   :  { %373 = vmatpush3.msra.mxu0 %v395_v36 }
  0x9c   :  { %v397_v37 = vpop.eup %396 }
  0x9d   :  { %374 = vmatprep.subr.mxu0 %v397_v37  ;;  %v399_v38 = vpop.eup %398  ;;  %v331_v8 = vpop.permute.xlu0 %330 }
  0x9e   :  { %375 = vmatpush3.msra.mxu0 %v397_v37  ;;  %v336_v10 = vrot.slane %v331_v8, %v335_v6 }
  0x9f   :  { %376 = vmatprep.subr.mxu0 %v399_v38 }
  0xa0   :  { %377 = vmatpush3.msra.mxu0 %v399_v38 }
  0xa1   :  { %379 = vmatmul.mubr.msk.f32.vlgmr.msra.gmra.mxu0 %vm116_vm0, %v103_v39 }
 0x161   :  { %v380_v42 = vpop.f32.mrf.mxu0 }
 0x162   :  { %v195_v43 = vadd.f32 %v380_v42, %v114_v41 }
 0x163   :  { %v189_v45 = vpop.f32.mrf.mxu0 }
 0x164   :  { %400 = vtanh.f32 %v195_v43  ;;  %v190_v46 = vadd.f32 %v189_v45, %v109_v44 }
 0x166   :  { %402 = vtanh.f32 %v190_v46 }
 0x171   :  { %v401_v47 = vpop.eup %400 }
 0x172   :  { %381 = vmatprep.subr.msk.mxu1 %vm221_vm2, %v401_v47 }
 0x173   :  { %v403_v48 = vpop.eup %402  ;;  %382 = vmatpush3.msk.msra.mxu1 %vm221_vm2, %v401_v47 }
 0x174   :  { %383 = vmatprep.subr.mxu1 %v403_v48 }
 0x175   :  { %384 = vmatpush3.msra.mxu1 %v403_v48 }
 0x176   :  { %386 = vmatmul.mubr.msk.f32.vlgmr.msra.gmra.mxu1 %vm214_vm1, %v201_v49 }
 0x236   :  { %v387_v51 = vpop.f32.mrf.mxu1 }
 0x237   :  { %v297_v52 = vadd.f32 %v387_v51, %v212_v50 }
 0x238   :  { %v291_v54 = vpop.f32.mrf.mxu1 }
 0x239   :  { %404 = vtanh.f32 %v297_v52  ;;  %v292_v55 = vadd.f32 %v291_v54, %v207_v53 }
 0x23b   :  { %406 = vtanh.f32 %v292_v55 }
 0x246   :  { %v405_v56 = vpop.eup %404 }
 0x247   :  { %v315_v58 = vmul.f32 %v405_v56, %v312_v57 }
 0x248   :  { %v407_v59 = vpop.eup %406 }
 0x249   :  { %v314_v61 = vmul.f32 %v407_v59, %v307_v60  ;;  %v319_v63 = vsel %vm318_vm4, %v315_v58, 0.0 }
 0x24b   :  { %v317_v62 = vsel %vm316_vm3, %v314_v61, 0.0 }
 0x24c   :  { %v320_v1 = vadd.f32 %v319_v63, %v317_v62 }
 0x24e   :  { %v321_v2 = vrot.slane %v320_v1, 4 }
 0x250   :  { %v322_v4 = vadd.f32 %v321_v2, %v320_v1 }
 0x252   :  { %v323_v5 = vrot.slane %v322_v4, 2 }
 0x254   :  { %v324_v7 = vadd.f32 %v323_v5, %v322_v4 }
 0x256   :  { %v325_v9 = vrot.slane %v324_v7, 1 }
 0x258   :  { %v326_v11 = vadd.f32 %v325_v9, %v324_v7 }
 0x25a   :  { %v337_v12 = vadd.f32 %v336_v10, %v326_v11 }
 0x25c   :  { %339 = vst.msk [vmem:[#allocation3] sm:$0x1] %vm338_vm5, %v337_v12 }
 0x25d   :  { %419 = shalt.err (!%p416_p4)
}
 0x25e   :  { %349 = dma.vmem_to_hbm [thread:$0]  %s347_s19, 16, %s558_s9, [#allocation4]  }
 0x25f   :  { %428 = dma.done.wait [#allocation4], 16  }
 0x260   :  { %429 = vsyncadd [#allocation4], 4294967280 }
 0x261   :  { %353 = vsyncpa [#allocation4], 1 }

</bundles_post_ra>
